<compile_context>
chip_gen: v6e
topology: v6e:2x2x1
jax: 0.10.0
libtpu: 0.0.40
codegen_flags: <defaults>
</compile_context>

<pallas_src>
import functools

import jax
import jax.numpy as jnp
from jax.experimental import pallas as pl
from jax.experimental.pallas import tpu as pltpu


# ----------------------------------------------------------------------------- #
# Helpers
# ----------------------------------------------------------------------------- #
def _round_up(x, m):
    return (x + m - 1) // m * m


@functools.lru_cache(maxsize=None)
def _vmem_limit_bytes():
    """Generation-aware scoped-VMEM limit: 70% of physical capacity, capped."""
    cap = 64 * 1024 * 1024  # conservative fallback (v7x physical VMEM)
    try:
        info = pltpu.get_tpu_info()
        cap = int(getattr(info, "vmem_capacity_bytes", cap))
    except Exception:
        pass
    return min(int(cap * 0.7), 96 * 1024 * 1024)


# ----------------------------------------------------------------------------- #
# Fused GEMM kernels:  out = [relu]( (A @ B) + bias [+ residual] )
# nk == 1 (the common case here): single K block, weight VMEM-resident, direct
# write to the output ref (no accumulator scratch).
# nk  > 1: K reduction grid axis ("arbitrary", last) with f32 VMEM accumulator.
# ----------------------------------------------------------------------------- #
def _gemm_kernel_nk1(*refs, relu, has_residual):
    it = iter(refs)
    a_ref = next(it)
    b_ref = next(it)
    bias_ref = next(it)
    res_ref = next(it) if has_residual else None
    o_ref = next(it)

    acc = jnp.dot(a_ref[...], b_ref[...], preferred_element_type=jnp.float32)
    acc = acc + bias_ref[...]
    if has_residual:
        acc = acc + res_ref[...].astype(jnp.float32)
    if relu:
        acc = jnp.maximum(acc, 0.0)
    o_ref[...] = acc.astype(o_ref.dtype)


def _gemm_kernel_nkk(*refs, relu, has_residual):
    it = iter(refs)
    a_ref = next(it)
    b_ref = next(it)
    bias_ref = next(it)
    res_ref = next(it) if has_residual else None
    o_ref = next(it)
    acc_ref = next(it)

    k = pl.program_id(1)
    part = jnp.dot(a_ref[...], b_ref[...], preferred_element_type=jnp.float32)

    @pl.when(k == 0)
    def _():
        acc_ref[...] = part            # first step writes directly (no zero-init)

    @pl.when(k > 0)
    def _():
        acc_ref[...] += part

    @pl.when(k == pl.num_programs(1) - 1)
    def _():
        acc = acc_ref[...] + bias_ref[...]
        if has_residual:
            acc = acc + res_ref[...].astype(jnp.float32)
        if relu:
            acc = jnp.maximum(acc, 0.0)
        o_ref[...] = acc.astype(o_ref.dtype)


def matmul_fused(a, b, bias, *, residual=None, relu=False,
                 out_dtype=jnp.float32, operand_dtype=jnp.bfloat16,
                 tm_max=256, tk_max=8192):
    """A:(M,K) @ B:(K,N) with fused per-column bias, optional residual (M,N)
    add and ReLU.  Accumulation is f32; operands default to bf16."""
    M, K = a.shape
    K2, N = b.shape
    assert K == K2
    bias = bias.reshape(1, N).astype(jnp.float32)

    # --- tile selection: M tiled at <=256 (multiple of 16 for bf16 packing),
    #     K kept as a single VMEM-resident block whenever it fits. ------------
    tm = min(tm_max, _round_up(M, 16))
    Mp = _round_up(M, tm)
    if K <= tk_max:
        nk, tk, Kp = 1, K, K
    else:
        nk = pl.cdiv(K, tk_max)
        tk = _round_up(pl.cdiv(K, nk), 128)
        Kp = tk * nk

    # --- pad & cast operands --------------------------------------------------
    a = a.astype(operand_dtype)
    b = b.astype(operand_dtype)
    if Mp != M or Kp != K:
        a = jnp.pad(a, ((0, Mp - M), (0, Kp - K)))
    if Kp != K:
        b = jnp.pad(b, ((0, Kp - K), (0, 0)))

    has_residual = residual is not None
    in_arrays = [a, b, bias]
    if has_residual:
        res = residual
        if Mp != M:
            res = jnp.pad(res, ((0, Mp - M), (0, 0)))
        in_arrays.append(res)

    if nk == 1:
        in_specs = [
            pl.BlockSpec((tm, tk), lambda i: (i, 0)),
            pl.BlockSpec((tk, N), lambda i: (0, 0)),     # constant -> VMEM-resident
            pl.BlockSpec((1, N), lambda i: (0, 0)),
        ]
        if has_residual:
            in_specs.append(pl.BlockSpec((tm, N), lambda i: (i, 0)))
        grid = (Mp // tm,)
        out_specs = pl.BlockSpec((tm, N), lambda i: (i, 0))
        scratch = []
        kernel = functools.partial(_gemm_kernel_nk1, relu=relu,
                                   has_residual=has_residual)
        dims = ("parallel",)
    else:
        in_specs = [
            pl.BlockSpec((tm, tk), lambda i, k: (i, k)),
            pl.BlockSpec((tk, N), lambda i, k: (k, 0)),
            pl.BlockSpec((1, N), lambda i, k: (0, 0)),
        ]
        if has_residual:
            in_specs.append(pl.BlockSpec((tm, N), lambda i, k: (i, 0)))
        grid = (Mp // tm, nk)
        out_specs = pl.BlockSpec((tm, N), lambda i, k: (i, 0))
        scratch = [pltpu.VMEM((tm, N), jnp.float32)]
        kernel = functools.partial(_gemm_kernel_nkk, relu=relu,
                                   has_residual=has_residual)
        dims = ("parallel", "arbitrary")

    out = pl.pallas_call(
        kernel,
        out_shape=jax.ShapeDtypeStruct((Mp, N), out_dtype),
        grid_spec=pltpu.PrefetchScalarGridSpec(
            num_scalar_prefetch=0,
            grid=grid,
            in_specs=in_specs,
            out_specs=out_specs,
            scratch_shapes=scratch,
        ),
        compiler_params=pltpu.CompilerParams(
            dimension_semantics=dims,
            vmem_limit_bytes=_vmem_limit_bytes(),
        ),
    )(*in_arrays)
    if Mp != M:
        out = out[:M]
    return out


# ----------------------------------------------------------------------------- #
# LSTM: whole recurrence in one kernel invocation (no grid)
# ----------------------------------------------------------------------------- #
def lstm_kernel(xproj_ref, whh_ref, out_ref, *, T, H):
    B = out_ref.shape[0]

    def step(t, carry):
        h, c = carry
        gates = xproj_ref[t] + jnp.dot(h.astype(whh_ref.dtype), whh_ref[...],
                                       preferred_element_type=jnp.float32)
        i_g = jax.nn.sigmoid(gates[:, 0 * H:1 * H])
        f_g = jax.nn.sigmoid(gates[:, 1 * H:2 * H])
        g_g = jnp.tanh(gates[:, 2 * H:3 * H])
        o_g = jax.nn.sigmoid(gates[:, 3 * H:4 * H])
        c = f_g * c + i_g * g_g
        h = o_g * jnp.tanh(c)
        return (h, c)

    h0 = jnp.zeros((B, H), jnp.float32)
    c0 = jnp.zeros((B, H), jnp.float32)
    # Bounded unroll: keeps LLO scheduling visibility without vreg spills at
    # larger T (full unroll blows up live ranges).
    h_last, _ = jax.lax.fori_loop(0, T, step, (h0, c0), unroll=min(T, 8))
    out_ref[...] = h_last


def lstm_pallas(x_seq, lp):
    """Single-layer batch_first LSTM; returns the last hidden state h_T (B, H)."""
    B, T, D = x_seq.shape
    H = lp["whhT"].shape[0]

    # Input projection for all timesteps at once (fused Pallas GEMM).
    x_tb = jnp.transpose(x_seq, (1, 0, 2)).reshape(T * B, D)
    xproj = matmul_fused(
        x_tb, lp["wihT"], lp["b"],
        relu=False, out_dtype=jnp.float32,
    ).reshape(T, B, 4 * H)

    h_last = pl.pallas_call(
        functools.partial(lstm_kernel, T=T, H=H),
        out_shape=jax.ShapeDtypeStruct((B, H), jnp.float32),
        in_specs=[pl.BlockSpec(memory_space=pltpu.MemorySpace.VMEM)] * 2,
        out_specs=pl.BlockSpec(memory_space=pltpu.MemorySpace.VMEM),
        compiler_params=pltpu.CompilerParams(
            vmem_limit_bytes=_vmem_limit_bytes()),
    )(xproj, lp["whhT"])                     # W_hh^T resident in VMEM
    return h_last


# ----------------------------------------------------------------------------- #
# JAX glue: im2col, pooling, ResNet18 topology
# ----------------------------------------------------------------------------- #
def im2col(x, kh, kw, stride, pad):
    """x: (N, H, W, C) NHWC -> patches (N*OH*OW, kh*kw*C), feature order (kh, kw, C)."""
    N, H, W, C = x.shape
    xp = jnp.pad(x, ((0, 0), (pad, pad), (pad, pad), (0, 0)))
    OH = (H + 2 * pad - kh) // stride + 1
    OW = (W + 2 * pad - kw) // stride + 1
    cols = []
    for i in range(kh):
        for j in range(kw):
            cols.append(xp[:, i:i + stride * OH:stride, j:j + stride * OW:stride, :])
    patches = jnp.concatenate(cols, axis=-1)     # (N, OH, OW, kh*kw*C)
    return patches.reshape(N * OH * OW, kh * kw * C), OH, OW


def maxpool3x3_s2_p1(x):
    """MaxPool2d(kernel_size=3, stride=2, padding=1); padded values are ignored."""
    N, H, W, C = x.shape
    k, s, pad = 3, 2, 1
    xp = jnp.pad(x, ((0, 0), (pad, pad), (pad, pad), (0, 0)),
                 constant_values=-jnp.inf)
    OH = (H + 2 * pad - k) // s + 1
    OW = (W + 2 * pad - k) // s + 1
    out = jnp.full((N, OH, OW, C), -jnp.inf, dtype=x.dtype)
    for i in range(k):
        for j in range(k):
            out = jnp.maximum(out, xp[:, i:i + s * OH:s, j:j + s * OW:s, :])
    return out


def conv_apply(x, cp, *, relu, residual=None):
    """Conv2d(bias=False)+BN(+residual)(+ReLU) via fused Pallas GEMM with
    precomputed (BN-folded, channel-padded, bf16) weights."""
    KH, KW, stride, pad = cp["kh"], cp["kw"], cp["stride"], cp["pad"]
    Nf = x.shape[0]
    if KH == 1 and KW == 1:
        xs = x[:, ::stride, ::stride, :] if stride > 1 else x
        _, OH, OW, _ = xs.shape
        patches = xs.reshape(Nf * OH * OW, cp["icp"])
    else:
        patches, OH, OW = im2col(x, KH, KW, stride, pad)
    res2d = None
    if residual is not None:
        res2d = residual.reshape(-1, cp["ocp"])
    y = matmul_fused(patches, cp["wmat"], cp["bias"], residual=res2d,
                     relu=relu, out_dtype=jnp.bfloat16)
    return y.reshape(Nf, OH, OW, cp["ocp"])


def basic_block_apply(x, q):
    out1 = conv_apply(x, q["conv1"], relu=True)
    if "down" in q:
        identity = conv_apply(x, q["down"], relu=False)
    else:
        identity = x
    # y = relu( bn2(conv2(out1)) + identity )  -- residual & ReLU fused in the GEMM.
    return conv_apply(out1, q["conv2"], relu=True, residual=identity)


def resnet18_features(frames_nchw, rp):
    x = jnp.transpose(frames_nchw, (0, 2, 3, 1)).astype(jnp.bfloat16)  # NCHW -> NHWC
    x = conv_apply(x, rp["conv1"], relu=True)
    x = maxpool3x3_s2_p1(x)
    for name in ("layer1", "layer2", "layer3", "layer4"):
        for q in rp[name]:
            x = basic_block_apply(x, q)
    # AdaptiveAvgPool2d((1,1)) + flatten  (resnet.fc is Identity).
    # layer4 OC=512 is not channel-padded, so the mean is exact.
    return jnp.mean(x.astype(jnp.float32), axis=(1, 2))    # (Nf, 512)


def cnn_lstm_forward(x, prepped):
    """x: (B, T, C, H, W) float32 -> logits (B, num_classes)."""
    B, T, C, H, W = x.shape
    frames = x.reshape(B * T, C, H, W)
    feats = resnet18_features(frames, prepped["resnet"])    # (B*T, 512)
    feats = feats.reshape(B, T, 512)
    h_last = lstm_pallas(feats, prepped["lstm"])            # (B, 256)
    fc = prepped["fc"]
    out = matmul_fused(h_last, fc["wT"], fc["b"], relu=False,
                       out_dtype=jnp.float32, operand_dtype=jnp.float32)
    return out[:, :fc["nc"]]


# ----------------------------------------------------------------------------- #
# One-time parameter preparation (BN folding, transposes, channel padding, bf16)
# ----------------------------------------------------------------------------- #
def _prep_conv(w, bn, *, stride, pad, ic_pad=None, eps=1e-5):
    OC, IC, KH, KW = (int(d) for d in w.shape)
    ICp = IC if ic_pad is None else int(ic_pad)
    OCp = _round_up(OC, 128)                       # lane-dense output columns
    # Fold BN into the weights / bias in f32 (single rounding to bf16).
    scale = bn["gamma"] / jnp.sqrt(bn["var"] + eps)
    bias = bn["beta"] - bn["mean"] * scale
    w32 = w.astype(jnp.float32) * scale[:, None, None, None]
    if ICp != IC:
        w32 = jnp.pad(w32, ((0, 0), (0, ICp - IC), (0, 0), (0, 0)))
    wmat = jnp.transpose(w32, (2, 3, 1, 0)).reshape(KH * KW * ICp, OC)
    if OCp != OC:
        wmat = jnp.pad(wmat, ((0, 0), (0, OCp - OC)))
        bias = jnp.pad(bias, (0, OCp - OC))
    return {"wmat": wmat.astype(jnp.bfloat16),
            "bias": bias.astype(jnp.float32),
            "kh": KH, "kw": KW, "stride": stride, "pad": pad,
            "icp": ICp, "ocp": OCp}


def _prep_resnet(p):
    r = {"conv1": _prep_conv(p["conv1_w"], p["bn1"], stride=2, pad=3)}
    c = r["conv1"]["ocp"]                          # padded channel count flowing forward
    for name in ("layer1", "layer2", "layer3", "layer4"):
        blocks = []
        for blk in p[name]:
            q = {}
            q["conv1"] = _prep_conv(blk["conv1_w"], blk["bn1"],
                                    stride=blk["stride"], pad=1, ic_pad=c)
            q["conv2"] = _prep_conv(blk["conv2_w"], blk["bn2"],
                                    stride=1, pad=1, ic_pad=q["conv1"]["ocp"])
            if "down_w" in blk:
                q["down"] = _prep_conv(blk["down_w"], blk["down_bn"],
                                       stride=blk["stride"], pad=0, ic_pad=c)
            blocks.append(q)
            c = q["conv2"]["ocp"]
        r[name] = blocks
    return r


def prep_params(params):
    num_classes = int(params["fc_w"].shape[0])
    ncp = _round_up(num_classes, 128)
    fc_wT = jnp.pad(jnp.transpose(params["fc_w"]).astype(jnp.float32),
                    ((0, 0), (0, ncp - num_classes)))
    fc_b = jnp.pad(params["fc_b"].astype(jnp.float32), (0, ncp - num_classes))
    return {
        "resnet": _prep_resnet(params["resnet"]),
        "lstm": {
            "wihT": jnp.transpose(params["w_ih"]).astype(jnp.bfloat16),   # (512, 1024)
            "whhT": jnp.transpose(params["w_hh"]).astype(jnp.bfloat16),   # (256, 1024)
            "b": (params["b_ih"] + params["b_hh"]).astype(jnp.float32),
        },
        "fc": {"wT": fc_wT, "b": fc_b, "nc": num_classes},
    }


# ----------------------------------------------------------------------------- #
# Deterministic parameter initialization (shapes match torchvision resnet18 + LSTM)
# ----------------------------------------------------------------------------- #
class KeyGen:
    def __init__(self, key):
        self.key = key

    def __call__(self):
        self.key, sub = jax.random.split(self.key)
        return sub


def make_bn(c):
    return {
        "gamma": jnp.ones((c,), jnp.float32),
        "beta": jnp.zeros((c,), jnp.float32),
        "mean": jnp.zeros((c,), jnp.float32),
        "var": jnp.ones((c,), jnp.float32),
    }


def init_params(key, num_classes=2):
    kg = KeyGen(key)

    def conv_w(oc, ic, k):
        return 0.05 * jax.random.normal(kg(), (oc, ic, k, k), jnp.float32)

    def block(in_c, out_c, stride):
        p = {
            "stride": stride,
            "conv1_w": conv_w(out_c, in_c, 3), "bn1": make_bn(out_c),
            "conv2_w": conv_w(out_c, out_c, 3), "bn2": make_bn(out_c),
        }
        if stride != 1 or in_c != out_c:
            p["down_w"] = conv_w(out_c, in_c, 1)
            p["down_bn"] = make_bn(out_c)
        return p

    resnet = {
        "conv1_w": conv_w(64, 3, 7), "bn1": make_bn(64),
        "layer1": [block(64, 64, 1), block(64, 64, 1)],
        "layer2": [block(64, 128, 2), block(128, 128, 1)],
        "layer3": [block(128, 256, 2), block(256, 256, 1)],
        "layer4": [block(256, 512, 2), block(512, 512, 1)],
    }
    H, D = 256, 512
    return {
        "resnet": resnet,
        "w_ih": 0.05 * jax.random.normal(kg(), (4 * H, D), jnp.float32),
        "w_hh": 0.05 * jax.random.normal(kg(), (4 * H, H), jnp.float32),
        "b_ih": jnp.zeros((4 * H,), jnp.float32),
        "b_hh": jnp.zeros((4 * H,), jnp.float32),
        "fc_w": 0.05 * jax.random.normal(kg(), (num_classes, H), jnp.float32),
        "fc_b": jnp.zeros((num_classes,), jnp.float32),
    }


# ----------------------------------------------------------------------------- #
if __name__ == "__main__":
    B, T, C, H, W = 2, 8, 3, 16, 16          # small shapes; ResNet18 needs 3 input channels
    num_classes = 2

    x = jax.random.normal(jax.random.PRNGKey(0), (B, T, C, H, W), jnp.float32)
    params = init_params(jax.random.PRNGKey(42), num_classes=num_classes)
    prepped = prep_params(params)            # one-time weight prep (BN fold, transpose, bf16)

    out = cnn_lstm_forward(x, prepped)
    out = jax.block_until_ready(out)
    assert out.shape == (B, num_classes), out.shape
    assert bool(jnp.all(jnp.isfinite(out)))
    print("KERNEL_OK")
</pallas_src>

<mosaic_0001>
module attributes {stable_mosaic.version = 11 : i64} {
  func.func @_gemm_kernel_nk1(%arg0: i32, %arg1: memref<256x147xbf16, #tpu.memory_space<vmem>>, %arg2: memref<147x128xbf16, #tpu.memory_space<vmem>>, %arg3: memref<1x128xf32, #tpu.memory_space<vmem>>, %arg4: memref<256x128xbf16, #tpu.memory_space<vmem>>) attributes {dimension_semantics = [#tpu.dimension_semantics<parallel>], iteration_bounds = array<i64: 4>, scalar_prefetch = 0 : i64, scratch_operands = 0 : i64, tpu.core_type = #tpu.core_type<tc>, window_params = [{transform_indices = @transform_0, window_bounds = array<i64: 256, 147>}, {pipeline_mode = #tpu.pipeline_mode<synchronous>, transform_indices = @transform_1, window_bounds = array<i64: 147, 128>}, {pipeline_mode = #tpu.pipeline_mode<synchronous>, transform_indices = @transform_2, window_bounds = array<i64: 1, 128>}, {transform_indices = @transform_3, window_bounds = array<i64: 256, 128>}]} {
    %c0 = arith.constant 0 : index
    %c0_0 = arith.constant 0 : index
    %0 = vector.load %arg1[%c0, %c0_0] : memref<256x147xbf16, #tpu.memory_space<vmem>>, vector<256x147xbf16>
    %c0_1 = arith.constant 0 : index
    %c0_2 = arith.constant 0 : index
    %1 = vector.load %arg2[%c0_1, %c0_2] : memref<147x128xbf16, #tpu.memory_space<vmem>>, vector<147x128xbf16>
    %cst = arith.constant dense<0.000000e+00> : vector<256x128xf32>
    %2 = tpu.matmul %0, %1, %cst {dimension_numbers = #tpu.dot_dimension_numbers<[1], [0], [0], [1], [0, 0, 1, 1], [], []>} : vector<256x147xbf16>, vector<147x128xbf16>, vector<256x128xf32> -> vector<256x128xf32>
    %c0_3 = arith.constant 0 : index
    %c0_4 = arith.constant 0 : index
    %3 = vector.load %arg3[%c0_3, %c0_4] : memref<1x128xf32, #tpu.memory_space<vmem>>, vector<1x128xf32>
    %4 = vector.broadcast %3 : vector<1x128xf32> to vector<256x128xf32>
    %5 = arith.addf %2, %4 : vector<256x128xf32>
    %cst_5 = arith.constant 0.000000e+00 : f32
    %6 = vector.broadcast %cst_5 : f32 to vector<256x128xf32>
    %7 = arith.maximumf %5, %6 : vector<256x128xf32>
    %8 = arith.truncf %7 : vector<256x128xf32> to vector<256x128xbf16>
    %c0_6 = arith.constant 0 : index
    %c0_7 = arith.constant 0 : index
    %9 = vector.load %arg4[%c0_6, %c0_7] : memref<256x128xbf16, #tpu.memory_space<vmem>>, vector<256x128xbf16>
    tpu.vector_store %arg4[%c0_6, %c0_7], %8 {strides = array<i32>} : memref<256x128xbf16, #tpu.memory_space<vmem>>, vector<256x128xbf16>,
    return
  }
  func.func @transform_0(%arg0: i32) -> (i32, i32) {
    %c0_i32 = arith.constant 0 : i32
    %c0_i32_0 = arith.constant 0 : i32
    return %arg0, %c0_i32 : i32, i32
  }
  func.func @transform_1(%arg0: i32) -> (i32, i32) {
    %c0_i32 = arith.constant 0 : i32
    %c0_i32_0 = arith.constant 0 : i32
    %c0_i32_1 = arith.constant 0 : i32
    return %c0_i32, %c0_i32_0 : i32, i32
  }
  func.func @transform_2(%arg0: i32) -> (i32, i32) {
    %c0_i32 = arith.constant 0 : i32
    %c0_i32_0 = arith.constant 0 : i32
    %c0_i32_1 = arith.constant 0 : i32
    return %c0_i32, %c0_i32_0 : i32, i32
  }
  func.func @transform_3(%arg0: i32) -> (i32, i32) {
    %c0_i32 = arith.constant 0 : i32
    %c0_i32_0 = arith.constant 0 : i32
    return %arg0, %c0_i32 : i32, i32
  }
}

</mosaic_0001>

<bundles_post_ra>
// kernel: tpu_custom_call.1
= control target key start
LH: loop header
LB: loop body
LE: loop exit
PB: predicated region body
PF: predicated region fallthrough
CT: control target
= control target key end

     0   :  { %8 = vsyncpa [#allocation3], 0  ;;  %s1602_s0 = inlined_call_operand.vmem [shape: bf16[1024,147], index: 0, kind: input, shape index: {}]   ;;  %s1603_s1 = inlined_call_operand.vmem [shape: bf16[147,128], index: 1, kind: input, shape index: {}]   ;;  %s1604_s2 = inlined_call_operand.vmem [shape: f32[1,128], index: 2, kind: input, shape index: {}]   ;;  %s1605_s3 = inlined_call_operand.hbm [shape: bf16[1024,128], index: 3, kind: output, shape index: {}]  }
   0x1   :  { %10 = vsyncpa [#allocation3 + $0x1], 0  ;;  %s1361_s12 = smov 0   ;;  %s1363_s13 = smov 0  }
   0x2   :  { %s1365_s14 = smov 0   ;;  %s1367_s15 = smov 0  }
   0x3 LB: > { %s1382_s16 = sadd.s32 4294967295, %s1334_s15   ;;  %s920_s17 = sadd.s32 4294967294, %s1334_s15   ;;  %s1334_s15 = sphi %s1367_s15, %s1611_s15   ;;  %s1330_s14 = sphi %s1365_s14, %s1610_s14   ;;  %s1326_s13 = sphi %s1363_s13, %s1609_s13   ;;  %s1322_s12 = sphi %s1361_s12, %s1608_s12  }
   0x4   : > { %s1386_s18 = sadd.s32 1, %s1334_s15   ;;  %s91_s19 = sadd.s32 1, %s1330_s14 }
   0x5   : > { %s88_s20 = ssub.s32 %s1334_s15, %s1386_s18  ;;  %p101_p0 = scmp.ne.s32.totalorder %s1330_s14, %s1326_s13 }
   0x6   : > { %p89_p1 = scmp.eq.s32.totalorder %s88_s20, 0  ;;  %p102_p2 = scmp.eq.s32.totalorder %s1382_s16, 3 }
   0x7   : > { %p107_p3 = scmp.ne.s32.totalorder %s1326_s13, %s1322_s12  ;;  %p108_p4 = scmp.eq.s32.totalorder %s920_s17, 3 }
   0x8   : > { %s1397_s21 = scalar_select %p89_p1, %s1330_s14, %s91_s19  }
   0x9   : > { %p1399_p5 = por %p102_p2, %p101_p0  ;;  %p1403_p6 = por %p108_p4, %p107_p3 }
   0xa   : > { %p923_p7 = scmp.ge.s32.totalorder %s1334_s15, 1  ;;  %p142_p8 = scmp.lt.s32.totalorder %s1334_s15, 5 }
   0xc   : > { %p143_p9 = pnand %p923_p7, %p142_p8 }
   0xd   : > { %s925_s30 = sshll.u32 (!%p143_p9), %s1382_s16, 5  ;;  %s1338_s24 = smov (!%p143_p9), [#allocation2]  }
   0xe   : > { %146 = sbr.rel (%p143_p9) target bundleno = 333 (0x14d), region = 32  ;;  %p168_p10 = scmp.lt.s32.totalorder (!%p143_p9), %s925_s30, 127 }
   0xf   : > { %s1278_s25 = sshll.u32 (!%p143_p9), %s1338_s24, 4  ;;  %s1279_s25 = int_to_ptr.vmem [resolvable:$false] %s1278_s25 }
  0x10   : > { %s1280_s26 = scalar_lea.vmem (!%p143_p9), %s1279_s25, 4096 }
  0x13   : > { %v1216_v0 = vld [vmem:[%s1603_s1 + $0x38] sm:$0xff]   ;;  %v1336_v1 = vmov 0   ;;  %v1217_v2 = vld [vmem:[%s1603_s1 + $0x30] sm:$0xff]   ;;  %v1218_v3 = vld [vmem:[%s1603_s1 + $0x28] sm:$0xff]   ;;  %s1613_s30 = smov (!%p168_p10, %s925_s30), 127  ;;  %vm435_vm0 = vcmask 154624  }
  0x14   : > { %491 = vmatprep.subr.bf16.mxu0 %v1336_v1  ;;  %1153 = vmatprep.subr.bf16.mxu1 %v1336_v1  ;;  %v1219_v4 = vld [vmem:[%s1603_s1 + $0x20] sm:$0xff]   ;;  %s1024_s6 = sshll.u32 %s1613_s30, 3  ;;  %v1220_v5 = vld [vmem:[%s1603_s1 + $0x18] sm:$0xff]   ;;  %v1221_v8 = vld [vmem:[%s1603_s1 + $0x10] sm:$0xff]   ;;  %vm484_vm1 = vcmask 1040384   ;;  %vm485_vm2 = vcmask 1041408  }
  0x15   : > { %492 = vmatpush1.bf16.msra.mxu0 %v1216_v0  ;;  %1163 = vmatpush1.bf16.msra.mxu1 %v1216_v0  ;;  %s1425_s9 = scalar_lea.vmem %s1602_s0, %s1024_s6  ;;  %v1222_v9 = vld [vmem:[%s1603_s1 + $0x8] sm:$0xff]   ;;  %v1337_v10 = vmov 65535   ;;  %v1223_v12 = vld [vmem:[%s1603_s1] sm:$0xff]   ;;  %s164_s6 = sand.u32 1, %s1326_s13  }
  0x16   : > { %493 = vmatprep.subr.bf16.mxu0 %v1336_v1  ;;  %1154 = vmatprep.subr.bf16.mxu1 %v1336_v1  ;;  %v1228_v6 = vld [vmem:[%s1425_s9 + $0x4] ss:$8 sps:$4 sm:$0xff]   ;;  %v486_v11 = vsel %vm484_vm1, 4294967295, %v1337_v10  ;;  %v1224_v13 = vld [vmem:[%s1603_s1 + $0x48] ss:$0 sps:$4 sm:$0x33]  }
  0x17   : > { %v1231_v7 = vld [vmem:[%s1425_s9 + $0x84] ss:$8 sps:$4 sm:$0xff]   ;;  %971 = vmatprep.mubr.msk.bf16.mxu0 %vm435_vm0, %v1228_v6  ;;  %v487_v14 = vsel %vm485_vm2, %v486_v11, 0  ;;  %v1226_v17 = vld [vmem:[%s1425_s9] ss:$8 sps:$4 sm:$0xff]   ;;  %s924_s7 = sshll.u32 %s164_s6, 7 }
  0x18   : > { %979 = vmatprep.mubr.msk.bf16.mxu1 %vm435_vm0, %v1231_v7  ;;  %v489_v15 = vand.u32 %v1224_v13, %v487_v14  ;;  %v1225_v16 = vld [vmem:[%s1603_s1 + $0x40] sm:$0xff]   ;;  %v1232_v19 = vld [vmem:[%s1425_s9 + $0x14] ss:$8 sps:$4 sm:$0xff]   ;;  %v1236_v21 = vld [vmem:[%s1425_s9 + $0x10] ss:$8 sps:$4 sm:$0xff]   ;;  %s1505_s8 = scalar_lea.vmem [#allocation2], %s924_s7 }
  0x19   : > { %494 = vmatpush1.bf16.msra.mxu0 %v1217_v2  ;;  %1164 = vmatpush1.bf16.msra.mxu1 %v1217_v2  ;;  %v1229_v18 = vld [vmem:[%s1425_s9 + $0x80] ss:$8 sps:$4 sm:$0xff]   ;;  %v1234_v20 = vld [vmem:[%s1425_s9 + $0x94] ss:$8 sps:$4 sm:$0xff]   ;;  %v1237_v22 = vld [vmem:[%s1425_s9 + $0x90] ss:$8 sps:$4 sm:$0xff]  }
  0x1a   : > { %495 = vmatprep.subr.bf16.mxu0 %v1336_v1  ;;  %1155 = vmatprep.subr.bf16.mxu1 %v1336_v1  ;;  %v1238_v23 = vld [vmem:[%s1425_s9 + $0x24] ss:$8 sps:$4 sm:$0xff]   ;;  %v1242_v25 = vld [vmem:[%s1425_s9 + $0x20] ss:$8 sps:$4 sm:$0xff]   ;;  %v1244_v27 = vld [vmem:[%s1425_s9 + $0x34] ss:$8 sps:$4 sm:$0xff]  }
  0x1b   : > { %v1240_v24 = vld [vmem:[%s1425_s9 + $0xa4] ss:$8 sps:$4 sm:$0xff]   ;;  %v1243_v26 = vld [vmem:[%s1425_s9 + $0xa0] ss:$8 sps:$4 sm:$0xff]   ;;  %v1246_v28 = vld [vmem:[%s1425_s9 + $0xb4] ss:$8 sps:$4 sm:$0xff]  }
  0x1c   : > { %v1248_v29 = vld [vmem:[%s1425_s9 + $0x30] ss:$8 sps:$4 sm:$0xff]   ;;  %v1250_v31 = vld [vmem:[%s1425_s9 + $0x44] ss:$8 sps:$4 sm:$0xff]   ;;  %v1254_v33 = vld [vmem:[%s1425_s9 + $0x40] ss:$8 sps:$4 sm:$0xff]  }
  0x1d   : > { %496 = vmatpush1.bf16.msra.mxu0 %v1218_v3  ;;  %1165 = vmatpush1.bf16.msra.mxu1 %v1218_v3  ;;  %v1249_v30 = vld [vmem:[%s1425_s9 + $0xb0] ss:$8 sps:$4 sm:$0xff]   ;;  %v1252_v32 = vld [vmem:[%s1425_s9 + $0xc4] ss:$8 sps:$4 sm:$0xff]   ;;  %v1255_v34 = vld [vmem:[%s1425_s9 + $0xc0] ss:$8 sps:$4 sm:$0xff]  }
  0x1e   : > { %497 = vmatprep.subr.bf16.mxu0 %v1336_v1  ;;  %1156 = vmatprep.subr.bf16.mxu1 %v1336_v1  ;;  %v1256_v35 = vld [vmem:[%s1425_s9 + $0x54] ss:$8 sps:$4 sm:$0xff]   ;;  %v1260_v37 = vld [vmem:[%s1425_s9 + $0x50] ss:$8 sps:$4 sm:$0xff]   ;;  %v1262_v39 = vld [vmem:[%s1425_s9 + $0x64] ss:$8 sps:$4 sm:$0xff]  }
  0x1f   : > { %v1258_v36 = vld [vmem:[%s1425_s9 + $0xd4] ss:$8 sps:$4 sm:$0xff]   ;;  %v1261_v38 = vld [vmem:[%s1425_s9 + $0xd0] ss:$8 sps:$4 sm:$0xff]   ;;  %v1264_v40 = vld [vmem:[%s1425_s9 + $0xe4] ss:$8 sps:$4 sm:$0xff]  }
  0x20   : > { %v1266_v41 = vld [vmem:[%s1425_s9 + $0x60] ss:$8 sps:$4 sm:$0xff]   ;;  %v1268_v43 = vld [vmem:[%s1425_s9 + $0x74] ss:$8 sps:$4 sm:$0xff]   ;;  %v1272_v45 = vld [vmem:[%s1425_s9 + $0x70] ss:$8 sps:$4 sm:$0xff]  }
  0x21   : > { %498 = vmatpush1.bf16.msra.mxu0 %v1219_v4  ;;  %1166 = vmatpush1.bf16.msra.mxu1 %v1219_v4  ;;  %v1267_v42 = vld [vmem:[%s1425_s9 + $0xe0] ss:$8 sps:$4 sm:$0xff]   ;;  %v1270_v44 = vld [vmem:[%s1425_s9 + $0xf4] ss:$8 sps:$4 sm:$0xff]   ;;  %v1273_v46 = vld [vmem:[%s1425_s9 + $0xf0] ss:$8 sps:$4 sm:$0xff]  }
  0x22   : > { %499 = vmatprep.subr.bf16.mxu0 %v1336_v1  ;;  %1157 = vmatprep.subr.bf16.mxu1 %v1336_v1  ;;  %v1496_v47 = vld [vmem:[%s1604_s2] ss:$0 sm:$0xff]  ;;  %s1057_s9 = sshll.u32 %s1382_s16, 11  ;;  %s858_s10 = sshll.u32 %s1505_s8, 4  ;;  %s1556_s10 = int_to_ptr.vmem [resolvable:$true] %s858_s10 }
  0x23   : > { %s1554_s19 = scalar_lea.hbm %s1605_s3, %s1057_s9  ;;  %s1562_s16 = scalar_lea.sflag [#allocation3], %s164_s6 }
  0x24   : > { %s1274_s20 = scalar_lea.vmem %s1556_s10, 2048  ;;  %p1281_p0 = scmp.lt.s32.totalorder %s1556_s10, %s1279_s25 }
  0x25   : > { %500 = vmatpush1.bf16.msra.mxu0 %v1220_v5  ;;  %1167 = vmatpush1.bf16.msra.mxu1 %v1220_v5  ;;  %p1275_p11 = scmp.ne.s32.totalorder %s1556_s10, %s1274_s20  ;;  %p1282_p1 = scmp.lt.s32.totalorder %s1280_s26, %s1274_s20 }
  0x26   : > { %501 = vmatprep.subr.bf16.mxu0 %v1336_v1  ;;  %1158 = vmatprep.subr.bf16.mxu1 %v1336_v1 }
  0x27   : > { %p1276_p12 = pnand %p1275_p11, %p1399_p5  ;;  %p1283_p2 = por %p1282_p1, %p1281_p0 }
  0x29   : > { %502 = vmatpush1.bf16.msra.mxu0 %v1221_v8  ;;  %1168 = vmatpush1.bf16.msra.mxu1 %v1221_v8  ;;  %p1277_p13 = pneg %p1276_p12 }
  0x2a   : > { %503 = vmatprep.subr.bf16.mxu0 %v1336_v1  ;;  %1159 = vmatprep.subr.bf16.mxu1 %v1336_v1 }
  0x2b   : > { %p1284_p3 = pnand %p1283_p2, %p1277_p13 }
  0x2d   : > { %504 = vmatpush1.bf16.msra.mxu0 %v1222_v9  ;;  %1169 = vmatpush1.bf16.msra.mxu1 %v1222_v9 }
  0x2e   : > { %505 = vmatprep.subr.bf16.mxu0 %v1336_v1  ;;  %1160 = vmatprep.subr.bf16.mxu1 %v1336_v1 }
  0x31   : > { %506 = vmatpush1.bf16.msra.mxu0 %v1223_v12  ;;  %1170 = vmatpush1.bf16.msra.mxu1 %v1223_v12 }
  0x32   : > { %519 = vmatprep.subr.bf16.mxu0 %v1336_v1  ;;  %1161 = vmatprep.subr.bf16.mxu1 %v1336_v1 }
  0x35   : > { %520 = vmatpush2.bf16.msra.mxu0 %v489_v15  ;;  %1171 = vmatpush2.bf16.msra.mxu1 %v489_v15 }
  0x36   : > { %521 = vmatprep.subr.bf16.mxu0 %v1336_v1  ;;  %1162 = vmatprep.subr.bf16.mxu1 %v1336_v1 }
  0x39   : > { %522 = vmatpush2.bf16.msra.mxu0 %v1225_v16  ;;  %1172 = vmatpush2.bf16.msra.mxu1 %v1225_v16 }
  0x3c   : > { %524 = vmatmul.mubr.bf16.vlgmr.msra.gmra.mxu0 %v1226_v17  ;;  %588 = vmatmul.mubr.bf16.vlgmr.msra.gmra.mxu1 %v1229_v18 }
  0x3d   : > { %972 = vmatprep.mubr.msk.bf16.mxu0 %vm435_vm0, %v1232_v19  ;;  %980 = vmatprep.mubr.msk.bf16.mxu1 %vm435_vm0, %v1234_v20 }
  0x44   : > { %532 = vmatmul.mubr.bf16.gmra.mxu0 %v1236_v21  ;;  %596 = vmatmul.mubr.bf16.gmra.mxu1 %v1237_v22 }
  0x45   : > { %973 = vmatprep.mubr.msk.bf16.mxu0 %vm435_vm0, %v1238_v23  ;;  %981 = vmatprep.mubr.msk.bf16.mxu1 %vm435_vm0, %v1240_v24 }
  0x4c   : > { %540 = vmatmul.mubr.bf16.gmra.mxu0 %v1242_v25  ;;  %604 = vmatmul.mubr.bf16.gmra.mxu1 %v1243_v26 }
  0x4d   : > { %974 = vmatprep.mubr.msk.bf16.mxu0 %vm435_vm0, %v1244_v27  ;;  %982 = vmatprep.mubr.msk.bf16.mxu1 %vm435_vm0, %v1246_v28 }
  0x54   : > { %548 = vmatmul.mubr.bf16.gmra.mxu0 %v1248_v29  ;;  %612 = vmatmul.mubr.bf16.gmra.mxu1 %v1249_v30 }
  0x55   : > { %975 = vmatprep.mubr.msk.bf16.mxu0 %vm435_vm0, %v1250_v31  ;;  %983 = vmatprep.mubr.msk.bf16.mxu1 %vm435_vm0, %v1252_v32 }
  0x5c   : > { %556 = vmatmul.mubr.bf16.gmra.mxu0 %v1254_v33  ;;  %620 = vmatmul.mubr.bf16.gmra.mxu1 %v1255_v34 }
  0x5d   : > { %976 = vmatprep.mubr.msk.bf16.mxu0 %vm435_vm0, %v1256_v35  ;;  %984 = vmatprep.mubr.msk.bf16.mxu1 %vm435_vm0, %v1258_v36 }
  0x64   : > { %564 = vmatmul.mubr.bf16.gmra.mxu0 %v1260_v37  ;;  %628 = vmatmul.mubr.bf16.gmra.mxu1 %v1261_v38 }
  0x65   : > { %977 = vmatprep.mubr.msk.bf16.mxu0 %vm435_vm0, %v1262_v39  ;;  %985 = vmatprep.mubr.msk.bf16.mxu1 %vm435_vm0, %v1264_v40 }
  0x6c   : > { %572 = vmatmul.mubr.bf16.gmra.mxu0 %v1266_v41  ;;  %636 = vmatmul.mubr.bf16.gmra.mxu1 %v1267_v42 }
  0x6d   : > { %978 = vmatprep.mubr.msk.bf16.mxu0 %vm435_vm0, %v1268_v43  ;;  %986 = vmatprep.mubr.msk.bf16.mxu1 %vm435_vm0, %v1270_v44 }
  0x74   : > { %580 = vmatmul.mubr.bf16.gmra.mxu0 %v1272_v45  ;;  %644 = vmatmul.mubr.bf16.gmra.mxu1 %v1273_v46 }
  0xfc   : > { %v525_v48 = vpop.f32.mrf.mxu0  ;;  %v589_v49 = vpop.f32.mrf.mxu1 }
  0xfd   : > { %v526_v52 = vadd.f32 %v1496_v47, %v525_v48  ;;  %v590_v53 = vadd.f32 %v1496_v47, %v589_v49 }
  0xfe   : > { %v527_v50 = vpop.f32.mrf.mxu0  ;;  %v591_v51 = vpop.f32.mrf.mxu1 }
  0xff   : > { %v652_v60 = vmax.f32 %v526_v52, 0.0  ;;  %v668_v61 = vmax.f32 %v590_v53, 0.0 }
 0x100   : > { %v528_v54 = vpop.f32.mrf.mxu0  ;;  %v592_v55 = vpop.f32.mrf.mxu1 }
 0x101   : > { %v529_v56 = vadd.f32 %v1496_v47, %v528_v54  ;;  %v593_v57 = vadd.f32 %v1496_v47, %v592_v55 }
 0x102   : > { %v530_v58 = vpop.f32.mrf.mxu0  ;;  %v594_v59 = vpop.f32.mrf.mxu1 }
 0x103   : > { %v653_v62 = vmax.f32 %v529_v56, 0.0  ;;  %v669_v63 = vmax.f32 %v593_v57, 0.0 }
 0x104   : > { %v533_v0 = vpop.f32.mrf.mxu0  ;;  %v597_v1 = vpop.f32.mrf.mxu1 }
 0x105   : > { %v1061_v2 = vpack.c.bf16 %v653_v62, %v652_v60  ;;  %v1101_v3 = vpack.c.bf16 %v669_v63, %v668_v61  ;;  %v534_v6 = vadd.f32 %v1496_v47, %v533_v0  ;;  %v598_v7 = vadd.f32 %v1496_v47, %v597_v1 }
 0x106   : > { %v535_v4 = vpop.f32.mrf.mxu0  ;;  %v599_v5 = vpop.f32.mrf.mxu1 }
 0x107   : > { %1062 = vst [vmem:[%s1505_s8] sm:$0xff] %v1061_v2   ;;  %1145 = vst [vmem:[%s1505_s8 + $0x40] sm:$0xff] %v1101_v3   ;;  %v654_v14 = vmax.f32 %v534_v6, 0.0  ;;  %v670_v15 = vmax.f32 %v598_v7, 0.0 }
 0x108   : > { %v536_v8 = vpop.f32.mrf.mxu0  ;;  %v600_v9 = vpop.f32.mrf.mxu1 }
 0x109   : > { %v537_v10 = vadd.f32 %v1496_v47, %v536_v8  ;;  %v601_v11 = vadd.f32 %v1496_v47, %v600_v9 }
 0x10a   : > { %v538_v12 = vpop.f32.mrf.mxu0  ;;  %v602_v13 = vpop.f32.mrf.mxu1 }
 0x10b   : > { %v655_v16 = vmax.f32 %v537_v10, 0.0  ;;  %v671_v17 = vmax.f32 %v601_v11, 0.0 }
 0x10c   : > { %v541_v18 = vpop.f32.mrf.mxu0  ;;  %v605_v19 = vpop.f32.mrf.mxu1 }
 0x10d   : > { %v1066_v20 = vpack.c.bf16 %v655_v16, %v654_v14  ;;  %v1106_v21 = vpack.c.bf16 %v671_v17, %v670_v15  ;;  %v542_v24 = vadd.f32 %v1496_v47, %v541_v18  ;;  %v606_v25 = vadd.f32 %v1496_v47, %v605_v19 }
 0x10e   : > { %v543_v22 = vpop.f32.mrf.mxu0  ;;  %v607_v23 = vpop.f32.mrf.mxu1 }
 0x10f   : > { %1138 = vst [vmem:[%s1505_s8 + $0x8] sm:$0xff] %v1066_v20   ;;  %1146 = vst [vmem:[%s1505_s8 + $0x48] sm:$0xff] %v1106_v21   ;;  %v656_v32 = vmax.f32 %v542_v24, 0.0  ;;  %v672_v33 = vmax.f32 %v606_v25, 0.0 }
 0x110   : > { %v544_v26 = vpop.f32.mrf.mxu0  ;;  %v608_v27 = vpop.f32.mrf.mxu1 }
 0x111   : > { %v545_v28 = vadd.f32 %v1496_v47, %v544_v26  ;;  %v609_v29 = vadd.f32 %v1496_v47, %v608_v27 }
 0x112   : > { %v546_v30 = vpop.f32.mrf.mxu0  ;;  %v610_v31 = vpop.f32.mrf.mxu1 }
 0x113   : > { %v657_v34 = vmax.f32 %v545_v28, 0.0  ;;  %v673_v35 = vmax.f32 %v609_v29, 0.0 }
 0x114   : > { %v549_v36 = vpop.f32.mrf.mxu0  ;;  %v613_v37 = vpop.f32.mrf.mxu1 }
 0x115   : > { %v1071_v38 = vpack.c.bf16 %v657_v34, %v656_v32  ;;  %v1111_v39 = vpack.c.bf16 %v673_v35, %v672_v33  ;;  %v550_v42 = vadd.f32 %v1496_v47, %v549_v36  ;;  %v614_v43 = vadd.f32 %v1496_v47, %v613_v37 }
 0x116   : > { %v551_v40 = vpop.f32.mrf.mxu0  ;;  %v615_v41 = vpop.f32.mrf.mxu1 }
 0x117   : > { %1139 = vst [vmem:[%s1505_s8 + $0x10] sm:$0xff] %v1071_v38   ;;  %1147 = vst [vmem:[%s1505_s8 + $0x50] sm:$0xff] %v1111_v39   ;;  %v658_v51 = vmax.f32 %v550_v42, 0.0  ;;  %v674_v52 = vmax.f32 %v614_v43, 0.0 }
 0x118   : > { %v552_v44 = vpop.f32.mrf.mxu0  ;;  %v616_v45 = vpop.f32.mrf.mxu1 }
 0x119   : > { %v553_v46 = vadd.f32 %v1496_v47, %v552_v44  ;;  %v617_v48 = vadd.f32 %v1496_v47, %v616_v45 }
 0x11a   : > { %v554_v49 = vpop.f32.mrf.mxu0  ;;  %v618_v50 = vpop.f32.mrf.mxu1 }
 0x11b   : > { %v659_v53 = vmax.f32 %v553_v46, 0.0  ;;  %v675_v54 = vmax.f32 %v617_v48, 0.0 }
 0x11c   : > { %v557_v55 = vpop.f32.mrf.mxu0  ;;  %v621_v56 = vpop.f32.mrf.mxu1 }
 0x11d   : > { %v1076_v57 = vpack.c.bf16 %v659_v53, %v658_v51  ;;  %v1116_v58 = vpack.c.bf16 %v675_v54, %v674_v52  ;;  %v558_v61 = vadd.f32 %v1496_v47, %v557_v55  ;;  %v622_v62 = vadd.f32 %v1496_v47, %v621_v56 }
 0x11e   : > { %v559_v59 = vpop.f32.mrf.mxu0  ;;  %v623_v60 = vpop.f32.mrf.mxu1 }
 0x11f   : > { %1140 = vst [vmem:[%s1505_s8 + $0x18] sm:$0xff] %v1076_v57   ;;  %1148 = vst [vmem:[%s1505_s8 + $0x58] sm:$0xff] %v1116_v58   ;;  %v660_v5 = vmax.f32 %v558_v61, 0.0  ;;  %v676_v6 = vmax.f32 %v622_v62, 0.0 }
 0x120   : > { %v560_v63 = vpop.f32.mrf.mxu0  ;;  %v624_v0 = vpop.f32.mrf.mxu1 }
 0x121   : > { %v561_v1 = vadd.f32 %v1496_v47, %v560_v63  ;;  %v625_v2 = vadd.f32 %v1496_v47, %v624_v0 }
 0x122   : > { %v562_v3 = vpop.f32.mrf.mxu0  ;;  %v626_v4 = vpop.f32.mrf.mxu1 }
 0x123   : > { %v661_v7 = vmax.f32 %v561_v1, 0.0  ;;  %v677_v8 = vmax.f32 %v625_v2, 0.0 }
 0x124   : > { %v565_v9 = vpop.f32.mrf.mxu0  ;;  %v629_v10 = vpop.f32.mrf.mxu1 }
 0x125   : > { %v1081_v11 = vpack.c.bf16 %v661_v7, %v660_v5  ;;  %v1121_v12 = vpack.c.bf16 %v677_v8, %v676_v6  ;;  %v566_v15 = vadd.f32 %v1496_v47, %v565_v9  ;;  %v630_v16 = vadd.f32 %v1496_v47, %v629_v10 }
 0x126   : > { %v567_v13 = vpop.f32.mrf.mxu0  ;;  %v631_v14 = vpop.f32.mrf.mxu1 }
 0x127   : > { %1141 = vst [vmem:[%s1505_s8 + $0x20] sm:$0xff] %v1081_v11   ;;  %1149 = vst [vmem:[%s1505_s8 + $0x60] sm:$0xff] %v1121_v12   ;;  %v662_v23 = vmax.f32 %v566_v15, 0.0  ;;  %v678_v24 = vmax.f32 %v630_v16, 0.0 }
 0x128   : > { %v568_v17 = vpop.f32.mrf.mxu0  ;;  %v632_v18 = vpop.f32.mrf.mxu1 }
 0x129   : > { %v569_v19 = vadd.f32 %v1496_v47, %v568_v17  ;;  %v633_v20 = vadd.f32 %v1496_v47, %v632_v18 }
 0x12a   : > { %v570_v21 = vpop.f32.mrf.mxu0  ;;  %v634_v22 = vpop.f32.mrf.mxu1 }
 0x12b   : > { %v663_v25 = vmax.f32 %v569_v19, 0.0  ;;  %v679_v26 = vmax.f32 %v633_v20, 0.0 }
 0x12c   : > { %v573_v27 = vpop.f32.mrf.mxu0  ;;  %v637_v28 = vpop.f32.mrf.mxu1 }
 0x12d   : > { %v1086_v29 = vpack.c.bf16 %v663_v25, %v662_v23  ;;  %v1126_v30 = vpack.c.bf16 %v679_v26, %v678_v24  ;;  %v574_v33 = vadd.f32 %v1496_v47, %v573_v27  ;;  %v638_v34 = vadd.f32 %v1496_v47, %v637_v28 }
 0x12e   : > { %v575_v31 = vpop.f32.mrf.mxu0  ;;  %v639_v32 = vpop.f32.mrf.mxu1 }
 0x12f   : > { %1142 = vst [vmem:[%s1505_s8 + $0x28] sm:$0xff] %v1086_v29   ;;  %1150 = vst [vmem:[%s1505_s8 + $0x68] sm:$0xff] %v1126_v30   ;;  %v664_v41 = vmax.f32 %v574_v33, 0.0  ;;  %v680_v42 = vmax.f32 %v638_v34, 0.0 }
 0x130   : > { %v576_v35 = vpop.f32.mrf.mxu0  ;;  %v640_v36 = vpop.f32.mrf.mxu1 }
 0x131   : > { %v577_v37 = vadd.f32 %v1496_v47, %v576_v35  ;;  %v641_v38 = vadd.f32 %v1496_v47, %v640_v36 }
 0x132   : > { %v578_v39 = vpop.f32.mrf.mxu0  ;;  %v642_v40 = vpop.f32.mrf.mxu1 }
 0x133   : > { %v665_v43 = vmax.f32 %v577_v37, 0.0  ;;  %v681_v44 = vmax.f32 %v641_v38, 0.0 }
 0x134   : > { %v581_v45 = vpop.f32.mrf.mxu0  ;;  %v645_v46 = vpop.f32.mrf.mxu1 }
 0x135   : > { %v1091_v48 = vpack.c.bf16 %v665_v43, %v664_v41  ;;  %v1131_v49 = vpack.c.bf16 %v681_v44, %v680_v42  ;;  %v582_v52 = vadd.f32 %v1496_v47, %v581_v45  ;;  %v646_v53 = vadd.f32 %v1496_v47, %v645_v46 }
 0x136   : > { %v583_v50 = vpop.f32.mrf.mxu0  ;;  %v647_v51 = vpop.f32.mrf.mxu1 }
 0x137   : > { %1143 = vst [vmem:[%s1505_s8 + $0x30] sm:$0xff] %v1091_v48   ;;  %1151 = vst [vmem:[%s1505_s8 + $0x70] sm:$0xff] %v1131_v49   ;;  %v666_v60 = vmax.f32 %v582_v52, 0.0  ;;  %v682_v61 = vmax.f32 %v646_v53, 0.0 }
 0x138   : > { %v584_v54 = vpop.f32.mrf.mxu0  ;;  %v648_v55 = vpop.f32.mrf.mxu1 }
 0x139   : > { %v585_v56 = vadd.f32 %v1496_v47, %v584_v54  ;;  %v649_v57 = vadd.f32 %v1496_v47, %v648_v55 }
 0x13a   : > { %v586_v58 = vpop.f32.mrf.mxu0  ;;  %v650_v59 = vpop.f32.mrf.mxu1 }
 0x13b   : > { %v667_v62 = vmax.f32 %v585_v56, 0.0  ;;  %v683_v63 = vmax.f32 %v649_v57, 0.0 }
 0x13d   : > { %v1096_v47 = vpack.c.bf16 %v667_v62, %v666_v60  ;;  %v1136_v0 = vpack.c.bf16 %v683_v63, %v682_v61 }
 0x13f   : > { %1144 = vst [vmem:[%s1505_s8 + $0x38] sm:$0xff] %v1096_v47   ;;  %1152 = vst [vmem:[%s1505_s8 + $0x78] sm:$0xff] %v1136_v0  }
 0x140   : > { %1287 = shalt.err (!%p1284_p3)
}
 0x141   : > { %s1288_s27 = scalar_lea.hbm %s1554_s19, 2048  ;;  %s1292_s30 = scalar_lea.hbm %s1605_s3, 8192 }
 0x142   : > { %p1289_p4 = scmp.ne.s32.totalorder %s1554_s19, %s1288_s27  ;;  %p1293_p9 = scmp.lt.s32.totalorder %s1554_s19, %s1605_s3 }
 0x143   : > { %p1294_p10 = scmp.lt.s32.totalorder %s1292_s30, %s1288_s27 }
 0x144   : > { %p1290_p7 = pnand %p1289_p4, %p1399_p5 }
 0x145   : > { %p1295_p11 = por %p1294_p10, %p1293_p9 }
 0x146   : > { %p1291_p8 = pneg %p1290_p7 }
 0x148   : > { %p1296_p12 = pnand %p1295_p11, %p1291_p8 }
 0x14a   : > { %1299 = shalt.err (!%p1296_p12)
}
 0x14b   : > { %s1339_s6 = smov 64   ;;  %s1340_s7 = smov 4  }
 0x14c   : > { %1173 = dma.vmem_to_hbm [thread:$0]  (%p1399_p5), %s1556_s10, 2048, %s1554_s19, %s1562_s16, %s1339_s6, %s1339_s6, %s1340_s7  }
 0x14d PF: > { %p1179_p13 = scmp.ge.s32.totalorder %s1334_s15, 2  ;;  %s873_s8 = sand.u32 1, %s1322_s12  }
 0x14e   : > { %s874_s9 = scalar_lea.sflag [#allocation3], %s873_s8 }
 0x14f   : > { %p1176_p0 = pnand %p1179_p13, %p1403_p6 }
 0x151   : > { %p1177_p1 = pneg %p1176_p0 }
 0x153   : > { %1317 = dma.done.wait (%p1177_p1), %s874_s9, 2048  }
 0x154   : > { %1319 = vsyncadd (%p1177_p1), %s874_s9, 4294965248  ;;  %p13_p2 = scmp.ge.s32.totalorder %s1386_s18, 6   ;;  %s1608_s12 = smov %s1326_s13 }
 0x155   : > { %s1609_s13 = smov %s1330_s14  ;;  %s1610_s14 = smov %s1397_s21 }
 0x156   : > { %s1611_s15 = smov %s1386_s18  ;;  %15 = sbr.rel (!%p13_p2) target bundleno = 3 (0x3), region = 67 }
 0x15b   :  { %879 = vsyncpa [#allocation3], 1 }
 0x15c   :  { %881 = vsyncpa [#allocation3 + $0x1], 1 }

</bundles_post_ra>
